<compile_context>
chip_gen: v7x
topology: tpu7x:2x2x1
jax: 0.10.0
libtpu: 0.0.40
codegen_flags: <defaults>
</compile_context>

<pallas_src>
import functools

import jax
import jax.numpy as jnp
from jax import lax
from jax.experimental import pallas as pl
from jax.experimental.pallas import tpu as pltpu


# --------------------------------------------------------------------------- #
# Kernels
# --------------------------------------------------------------------------- #
def _center_loss_kernel_pregathered(x_ref, c_ref, out_ref, *, batch_size,
                                    block_rows):
    """Fallback path: centers were gathered per-sample in the wrapper.

    x_ref   : (TB, D) VMEM, native dtype -- feature rows of this batch tile
    c_ref   : (TB, D) VMEM, native dtype -- gathered center rows (same tiling)
    out_ref : (1, 1)  f32 VMEM          -- partial sum over valid rows
    """
    i = pl.program_id(0)

    x = x_ref[...].astype(jnp.float32)
    c = c_ref[...].astype(jnp.float32)
    diff = x - c                                            # (TB, D) VPU
    d = jnp.sum(diff * diff, axis=-1, keepdims=True)        # (TB, 1) lane reduce
    d = jnp.clip(d, 1e-12, 1e12)                            # torch.clamp(1e-12, 1e12)

    # Mask padded rows of the ragged last tile (AFTER reduce+clip, see notes).
    row = i * block_rows + lax.broadcasted_iota(jnp.int32, (block_rows, 1), 0)
    d = jnp.where(row < batch_size, d, 0.0)

    out_ref[...] = jnp.sum(d, keepdims=True)                # (1, 1) partial


def _center_loss_kernel_resident(t_ref, x_ref, cen_ref, out_ref, *, batch_size,
                                 block_rows, num_classes):
    """Resident-centers path: gather the TB center rows in-kernel.

    t_ref   : (TB, 1) int32 VMEM -- labels of this batch tile
    x_ref   : (TB, D) VMEM       -- feature rows (native dtype, e.g. bf16)
    cen_ref : (C,  D) VMEM       -- full centers table, resident across steps
    out_ref : (1, 1)  f32 VMEM   -- partial sum over valid rows
    """
    i = pl.program_id(0)

    # Exact row selection via one-hot MXU matmul: 0/1 (bf16) x bf16 centers
    # with f32 accumulation reproduces the gathered rows bit-exactly.
    idx = jnp.clip(t_ref[...], 0, num_classes - 1)          # mirror mode="clip"
    cls = lax.broadcasted_iota(jnp.int32, (block_rows, num_classes), 1)
    onehot = (cls == idx).astype(cen_ref.dtype)             # (TB, C)
    center = jnp.dot(onehot, cen_ref[...],
                     preferred_element_type=jnp.float32)    # (TB, D) f32, exact

    diff = x_ref[...].astype(jnp.float32) - center          # f32 math
    d = jnp.sum(diff * diff, axis=-1, keepdims=True)        # (TB, 1)
    d = jnp.clip(d, 1e-12, 1e12)

    row = i * block_rows + lax.broadcasted_iota(jnp.int32, (block_rows, 1), 0)
    d = jnp.where(row < batch_size, d, 0.0)

    out_ref[...] = jnp.sum(d, keepdims=True)


# --------------------------------------------------------------------------- #
# Tiling heuristics
# --------------------------------------------------------------------------- #
def _sublane(dtype):
    """Sublane packing multiple: 8 for 32-bit, 16 for bf16/fp16, 32 for 8-bit."""
    return max(8, 32 // jnp.dtype(dtype).itemsize)


def _pick_block_rows(batch, feat_dim, itemsize, sublane, *,
                     bytes_per_block=4 << 20):
    """Rows per tile: multiple of `sublane`, ~4 MiB per streamed block.

    Two streamed inputs x 2 pipeline buffers -> ~16 MiB of pipeline VMEM,
    inside the 32 MiB scoped budget on every chip (and the 64 MiB physical
    VMEM on v7x).  Once the batch is non-trivial we force >= 2 tiles so the
    "parallel" grid axis can shard across v7x's two TensorCores.
    """
    rows = max(sublane, bytes_per_block // max(feat_dim * itemsize, 1))
    rows = (rows // sublane) * sublane

    if batch <= sublane:
        return batch                      # tiny batch: single full-extent tile

    # v7x: guarantee at least two tiles once splitting beats per-step overhead.
    if batch * feat_dim * itemsize > (2 << 20):
        half = -(-batch // 2)                         # ceil(B / 2)
        half = -(-half // sublane) * sublane          # round UP to sublane
        rows = min(rows, half)

    return batch if batch <= rows else rows


# --------------------------------------------------------------------------- #
# Wrapper
# --------------------------------------------------------------------------- #
def center_loss(inputs, targets, centers, loss_weight=1.0, block_rows=None,
                use_resident=None):
    """CenterLoss forward.  inputs: (B, D), targets: (B,) int, centers: (C, D)."""
    B, D = inputs.shape
    C, D2 = centers.shape
    assert D == D2, "feat_dim mismatch"

    x = inputs                                   # stream in native dtype
    targets = targets.astype(jnp.int32)
    in_item = jnp.dtype(x.dtype).itemsize
    c_item = jnp.dtype(centers.dtype).itemsize

    # Resident-centers + in-kernel one-hot MXU gather only when it is both
    # VMEM-cheap and guaranteed-exact/hidden (bf16 single-pass MXU).  Otherwise
    # fall back to an exact wrapper-side gather (still streamed natively).
    if use_resident is None:
        use_resident = (centers.dtype == jnp.bfloat16
                        and C * D * c_item <= (4 << 20)
                        and C <= 1024)

    sub = max(_sublane(x.dtype), 8 if use_resident else _sublane(centers.dtype))
    stream_item = in_item if use_resident else max(in_item, c_item)
    tb = block_rows if block_rows is not None else _pick_block_rows(
        B, D, stream_item, sub)
    num_tiles = -(-B // tb)

    # ----- VMEM budget (double-buffered pipeline + resident table + f32 temps)
    if use_resident:
        pipeline = 2 * tb * D * in_item + 2 * tb * 4          # x + targets bufs
        resident_b = 2 * C * D * c_item                        # centers block
        temps = 3 * tb * D * 4 + tb * C * c_item
    else:
        pipeline = 2 * tb * D * (in_item + c_item)             # x + c bufs
        resident_b = 0
        temps = 3 * tb * D * 4
    # TODO(synk): for extreme feat_dim where even an 8-row block overflows
    # 64 MiB, add a D-tiling ("arbitrary") grid axis with a pl.when(k==0) init.
    vmem_limit_bytes = int(min(max(pipeline + resident_b + temps + (4 << 20),
                                   32 << 20), 64 << 20))

    # ----- cost hint: memory-bound, trivially cheap
    flops = 3 * B * D + (2 * B * C * D if use_resident else 0)
    bytes_accessed = (B * D * in_item
                      + (C * D * c_item if use_resident else B * D * c_item)
                      + B * 4 + num_tiles * 4)
    cost = pl.CostEstimate(flops=flops, transcendentals=0,
                           bytes_accessed=bytes_accessed)

    if use_resident:
        kernel = functools.partial(_center_loss_kernel_resident, batch_size=B,
                                   block_rows=tb, num_classes=C)
        in_specs = [
            pl.BlockSpec((tb, 1), lambda i: (i, 0)),   # labels column
            pl.BlockSpec((tb, D), lambda i: (i, 0)),   # features tile
            pl.BlockSpec((C, D), lambda i: (0, 0)),    # resident centers (DMA once)
        ]
        operands = (targets.reshape(B, 1), x, centers)
    else:
        # Exact native-dtype gather of each sample's center row, once, outside
        # the kernel.  mode="clip" guards out-of-range labels.
        c = jnp.take(centers, targets, axis=0, mode="clip")
        kernel = functools.partial(_center_loss_kernel_pregathered,
                                   batch_size=B, block_rows=tb)
        in_specs = [
            pl.BlockSpec((tb, D), lambda i: (i, 0)),   # features tile
            pl.BlockSpec((tb, D), lambda i: (i, 0)),   # gathered centers tile
        ]
        operands = (x, c)

    partials = pl.pallas_call(
        kernel,
        out_shape=jax.ShapeDtypeStruct((num_tiles, 1), jnp.float32),
        grid=(num_tiles,),
        in_specs=in_specs,
        out_specs=pl.BlockSpec((1, 1), lambda i: (i, 0)),   # per-tile partial
        compiler_params=pltpu.CompilerParams(
            dimension_semantics=("parallel",),              # tiles independent
            vmem_limit_bytes=vmem_limit_bytes,
        ),
        cost_estimate=cost,
    )(*operands)

    # mean over batch (padded rows already contribute 0), then loss_weight.
    return (loss_weight / B) * jnp.sum(partials)


def center_loss_ref(inputs, targets, centers, loss_weight=1.0):
    """Pure-JAX reference mirroring the PyTorch forward (distance in f32)."""
    center = centers[targets]                                   # (B, D)
    x = inputs.astype(jnp.float32)
    c = center.astype(jnp.float32)
    dist = jnp.sum((x - c) ** 2, axis=-1)                       # (B,)
    loss = jnp.clip(dist, 1e-12, 1e12).mean()
    return loss_weight * loss


if __name__ == "__main__":
    key = jax.random.PRNGKey(0)
    k_c, k_x1, k_t1, k_x2, k_t2, k_x3, k_t3 = jax.random.split(key, 7)
    loss_weight = 1.0

    # Case 1: f32 params (wrapper-gather fallback path), single small tile.
    # batch=8, feat_dim=128, num_classes=16.
    B, D, C = 8, 128, 16
    centers = jax.random.normal(k_c, (C, D), dtype=jnp.float32)
    inputs = jax.random.normal(k_x1, (B, D), dtype=jnp.float32)
    targets = jax.random.randint(k_t1, (B,), 0, C, dtype=jnp.int32)
    out = jax.block_until_ready(center_loss(inputs, targets, centers, loss_weight))
    ref = center_loss_ref(inputs, targets, centers, loss_weight)
    assert jnp.allclose(out, ref, rtol=1e-5, atol=1e-5), (out, ref)

    # Case 2: bf16 native streaming + resident centers + in-kernel one-hot MXU
    # gather, ragged multi-tile grid (tiles of 16 rows, last one half-full).
    B2, D2, C2 = 40, 256, 16
    centers2 = jax.random.normal(k_c, (C2, D2), dtype=jnp.float32).astype(jnp.bfloat16)
    inputs2 = jax.random.normal(k_x2, (B2, D2), dtype=jnp.float32).astype(jnp.bfloat16)
    targets2 = jax.random.randint(k_t2, (B2,), 0, C2, dtype=jnp.int32)
    out2 = jax.block_until_ready(
        center_loss(inputs2, targets2, centers2, loss_weight, block_rows=16))
    ref2 = center_loss_ref(inputs2, targets2, centers2, loss_weight)
    assert jnp.allclose(out2, ref2, rtol=1e-5, atol=1e-5), (out2, ref2)

    # Case 3: f32 ragged multi-tile fallback path (forces in-kernel row mask).
    B3, D3 = 20, 256
    centers3 = jax.random.normal(k_c, (C, D3), dtype=jnp.float32)
    inputs3 = jax.random.normal(k_x3, (B3, D3), dtype=jnp.float32)
    targets3 = jax.random.randint(k_t3, (B3,), 0, C, dtype=jnp.int32)
    out3 = jax.block_until_ready(
        center_loss(inputs3, targets3, centers3, loss_weight, block_rows=8))
    ref3 = center_loss_ref(inputs3, targets3, centers3, loss_weight)
    assert jnp.allclose(out3, ref3, rtol=1e-5, atol=1e-5), (out3, ref3)

    print("KERNEL_OK")
</pallas_src>

<mosaic_0001>
module attributes {stable_mosaic.version = 11 : i64} {
  func.func @_center_loss_kernel_pregathered(%arg0: i32, %arg1: memref<8x128xf32, #tpu.memory_space<vmem>>, %arg2: memref<8x128xf32, #tpu.memory_space<vmem>>, %arg3: memref<1x1xf32, #tpu.memory_space<vmem>>) attributes {dimension_semantics = [#tpu.dimension_semantics<parallel>], iteration_bounds = array<i64: 1>, scalar_prefetch = 0 : i64, scratch_operands = 0 : i64, tpu.core_type = #tpu.core_type<tc>, window_params = [{transform_indices = @transform_0, window_bounds = array<i64: 8, 128>}, {transform_indices = @transform_1, window_bounds = array<i64: 8, 128>}, {transform_indices = @transform_2, window_bounds = array<i64: 1, 1>}]} {
    %c0 = arith.constant 0 : index
    %c0_0 = arith.constant 0 : index
    %0 = vector.load %arg1[%c0, %c0_0] : memref<8x128xf32, #tpu.memory_space<vmem>>, vector<8x128xf32>
    %c0_1 = arith.constant 0 : index
    %c0_2 = arith.constant 0 : index
    %1 = vector.load %arg2[%c0_1, %c0_2] : memref<8x128xf32, #tpu.memory_space<vmem>>, vector<8x128xf32>
    %2 = arith.subf %0, %1 : vector<8x128xf32>
    %3 = arith.mulf %2, %2 : vector<8x128xf32>
    %cst = arith.constant dense<0.000000e+00> : vector<8xf32>
    %4 = vector.multi_reduction <add>, %3, %cst [1] : vector<8x128xf32> to vector<8xf32>
    %5 = vector.shape_cast %4 : vector<8xf32> to vector<8x1xf32>
    %cst_3 = arith.constant 9.99999996E-13 : f32
    %cst_4 = arith.constant 9.99999995E+11 : f32
    %6 = vector.broadcast %cst_3 : f32 to vector<8x1xf32>
    %7 = arith.maximumf %6, %5 : vector<8x1xf32>
    %8 = vector.broadcast %cst_4 : f32 to vector<8x1xf32>
    %9 = arith.minimumf %8, %7 : vector<8x1xf32>
    %c8_i32 = arith.constant 8 : i32
    %10 = arith.muli %arg0, %c8_i32 : i32
    %11 = tpu.iota {dimensions = array<i32: 0>} : vector<8x1xi32>
    %12 = vector.broadcast %10 : i32 to vector<8x1xi32>
    %13 = arith.addi %12, %11 : vector<8x1xi32>
    %c8_i32_5 = arith.constant 8 : i32
    %14 = vector.broadcast %c8_i32_5 : i32 to vector<8x1xi32>
    %15 = arith.cmpi slt, %13, %14 : vector<8x1xi32>
    %cst_6 = arith.constant 0.000000e+00 : f32
    %16 = vector.broadcast %cst_6 : f32 to vector<8x1xf32>
    %17 = arith.select %15, %9, %16 : vector<8x1xi1>, vector<8x1xf32>
    %18 = vector.shape_cast %17 : vector<8x1xf32> to vector<1x8x1xf32>
    %cst_7 = arith.constant dense<0.000000e+00> : vector<1xf32>
    %19 = vector.multi_reduction <add>, %18, %cst_7 [1, 2] : vector<1x8x1xf32> to vector<1xf32>
    %20 = vector.shape_cast %19 : vector<1xf32> to vector<1x1x1xf32>
    %21 = vector.extract %20[0, 0, 0] : f32 from vector<1x1x1xf32>
    %22 = vector.broadcast %21 : f32 to vector<1x1xf32>
    %c0_8 = arith.constant 0 : index
    %c0_9 = arith.constant 0 : index
    %23 = vector.load %arg3[%c0_8, %c0_9] : memref<1x1xf32, #tpu.memory_space<vmem>>, vector<1x1xf32>
    tpu.vector_store %arg3[%c0_8, %c0_9], %22 {strides = array<i32>} : memref<1x1xf32, #tpu.memory_space<vmem>>, vector<1x1xf32>,
    return
  }
  func.func @transform_0(%arg0: i32) -> (i32, i32) {
    %c0_i32 = arith.constant 0 : i32
    %c0_i32_0 = arith.constant 0 : i32
    return %arg0, %c0_i32 : i32, i32
  }
  func.func @transform_1(%arg0: i32) -> (i32, i32) {
    %c0_i32 = arith.constant 0 : i32
    %c0_i32_0 = arith.constant 0 : i32
    return %arg0, %c0_i32 : i32, i32
  }
  func.func @transform_2(%arg0: i32) -> (i32, i32) {
    %c0_i32 = arith.constant 0 : i32
    %c0_i32_0 = arith.constant 0 : i32
    return %arg0, %c0_i32 : i32, i32
  }
}

</mosaic_0001>

<bundles_post_ra>
// kernel: tpu_custom_call.1
= control target key start
LH: loop header
LB: loop body
LE: loop exit
PB: predicated region body
PF: predicated region fallthrough
CT: control target
= control target key end

     0   :  { %7 = vsyncpa [#allocation3], 0  ;;  %s212_s0 = inlined_call_operand.hbm [shape: f32[8,128], index: 0, kind: input, shape index: {}]   ;;  %s213_s1 = inlined_call_operand.hbm [shape: f32[8,128], index: 1, kind: input, shape index: {}]   ;;  %s214_s2 = inlined_call_operand.hbm [shape: f32[1,1], index: 2, kind: output, shape index: {}]  }
   0x1   :  { %8 = vsyncpa [#allocation6], 0 }
   0x2   :  { %9 = vsyncpa [#allocation4], 0  ;;  %s158_s9 = smov [#allocation2]   ;;  %s159_s11 = smov [#allocation5]  }
   0x3   :  { %s16_s10 = sshll.u32 %s158_s9, 4  ;;  %s26_s12 = sshll.u32 %s159_s11, 4  ;;  %s17_s10 = int_to_ptr.vmem [resolvable:$true] %s16_s10  ;;  %s27_s12 = int_to_ptr.vmem [resolvable:$true] %s26_s12 }
   0x4   :  { %s86_s15 = scalar_lea.hbm %s212_s0, 128 }
   0x5   :  { %p87_p0 = scmp.ne.s32.totalorder %s212_s0, %s86_s15  ;;  %p90_p1 = scmp.lt.u32.totalorder %s86_s15, %s212_s0 }
   0x7   :  { %p92_p2 = pnand %p90_p1, %p87_p0 }
   0x9   :  { %95 = shalt.err (!%p92_p2)
}
   0xa   :  { %s96_s20 = scalar_lea.vmem %s17_s10, 128  ;;  %p101_p4 = scmp.lt.s32.totalorder %s17_s10, %s17_s10 }
   0xb   :  { %p97_p3 = scmp.ne.s32.totalorder %s17_s10, %s96_s20  ;;  %p102_p5 = scmp.lt.s32.totalorder %s96_s20, %s96_s20 }
   0xd   :  { %p103_p6 = por %p102_p5, %p101_p4 }
   0xf   :  { %p104_p7 = pnand %p103_p6, %p97_p3 }
  0x11   :  { %107 = shalt.err (!%p104_p7)
}
  0x12   :  { %19 = dma.hbm_to_vmem [thread:$0]  %s212_s0, 128, %s17_s10, [#allocation3]  }
  0x13   :  { %s108_s25 = scalar_lea.hbm %s213_s1, 128 }
  0x14   :  { %p109_p8 = scmp.ne.s32.totalorder %s213_s1, %s108_s25  ;;  %p112_p9 = scmp.lt.u32.totalorder %s108_s25, %s213_s1 }
  0x16   :  { %p114_p10 = pnand %p112_p9, %p109_p8 }
  0x18   :  { %117 = shalt.err (!%p114_p10)
}
  0x19   :  { %s118_s30 = scalar_lea.vmem %s27_s12, 128  ;;  %p123_p12 = scmp.lt.s32.totalorder %s27_s12, %s27_s12 }
  0x1a   :  { %p119_p11 = scmp.ne.s32.totalorder %s27_s12, %s118_s30  ;;  %p124_p13 = scmp.lt.s32.totalorder %s118_s30, %s118_s30 }
  0x1c   :  { %p125_p0 = por %p124_p13, %p123_p12 }
  0x1e   :  { %p126_p1 = pnand %p125_p0, %p119_p11 }
  0x20   :  { %129 = shalt.err (!%p126_p1)
}
  0x21   :  { %29 = dma.hbm_to_vmem [thread:$0]  %s213_s1, 128, %s27_s12, [#allocation6]  }
  0x22   :  { %152 = dma.done.wait [#allocation3], 128  }
  0x23   :  { %153 = vsyncadd [#allocation3], 4294967168 }
  0x24   :  { %154 = dma.done.wait [#allocation6], 128  }
  0x25   :  { %155 = vsyncadd [#allocation6], 4294967168  ;;  %v36_v0 = vld [vmem:[#allocation2] sm:$0xff]  ;;  %v37_v1 = vld [vmem:[#allocation5] sm:$0xff]  ;;  %vm51_vm0 = vcmask 7168   ;;  %s160_s1 = smov [#allocation7]  }
  0x26   :  { %v38_v2 = vsub.f32 %v36_v0, %v37_v1  ;;  %s71_s4 = sshll.u32 %s160_s1, 4  ;;  %vm63_vm1 = vcmask 0   ;;  %s72_s4 = int_to_ptr.vmem [resolvable:$true] %s71_s4 }
  0x27   :  { %s130_s6 = scalar_lea.vmem %s72_s4, 16  ;;  %s134_s7 = scalar_lea.vmem %s72_s4, 32 }
  0x28   :  { %v39_v3 = vmul.f32 %v38_v2, %v38_v2  ;;  %p131_p2 = scmp.ne.s32.totalorder %s72_s4, %s130_s6  ;;  %p135_p3 = scmp.lt.s32.totalorder %s72_s4, %s72_s4 }
  0x29   :  { %p136_p4 = scmp.lt.s32.totalorder %s134_s7, %s130_s6 }
  0x2a   :  { %40 = vadd.xlane.f32.xlu0 %v39_v3 }
  0x2b   :  { %p137_p5 = por %p136_p4, %p135_p3 }
  0x2d   :  { %p138_p6 = pnand %p137_p5, %p131_p2 }
  0xb7   :  { %v41_v4 = vpop.xlane.xlu0 %40 }
  0xb8   :  { %v42_v5 = vmax.f32 %v41_v4, 1e-12 }
  0xba   :  { %v43_v6 = vmin.f32 %v42_v5, 1e+12 }
  0xbc   :  { %v52_v7 = vsel %vm51_vm0, %v43_v6, 0.0 }
  0xbd   :  { %53 = vadd.xlane.f32.xlu0 %v52_v7 }
 0x14a   :  { %v54_v8 = vpop.xlane.xlu0 %53 }
 0x14b   :  { %v55_v9 = vrot.slane %v54_v8, 4 }
 0x14d   :  { %v56_v10 = vadd.f32 %v55_v9, %v54_v8 }
 0x14f   :  { %v57_v11 = vrot.slane %v56_v10, 2 }
 0x151   :  { %v58_v12 = vadd.f32 %v57_v11, %v56_v10 }
 0x153   :  { %v59_v13 = vrot.slane %v58_v12, 1 }
 0x155   :  { %v60_v14 = vadd.f32 %v59_v13, %v58_v12 }
 0x157   :  { %81 = vpush %v60_v14 }
 0x188   :  { %s82_s5 = spop %81 }
 0x189   :  { %v62_v15 = vstv %s82_s5 }
 0x18a   :  { %64 = vst.msk [vmem:[#allocation7] sm:$0x1] %vm63_vm1, %v62_v15 }
 0x18b   :  { %141 = shalt.err (!%p138_p6)
}
 0x18c   :  { %s142_s10 = scalar_lea.hbm %s214_s2, 16 }
 0x18d   :  { %p143_p7 = scmp.ne.s32.totalorder %s214_s2, %s142_s10  ;;  %p146_p8 = scmp.lt.u32.totalorder %s142_s10, %s214_s2 }
 0x18f   :  { %p148_p9 = pnand %p146_p8, %p143_p7 }
 0x191   :  { %151 = shalt.err (!%p148_p9)
}
 0x192   :  { %74 = dma.vmem_to_hbm [thread:$0]  %s72_s4, 16, %s214_s2, [#allocation4]  }
 0x193   :  { %156 = dma.done.wait [#allocation4], 16  }
 0x194   :  { %157 = vsyncadd [#allocation4], 4294967280 }
 0x195   :  { %78 = vsyncpa [#allocation3], 1 }
 0x196   :  { %79 = vsyncpa [#allocation6], 1 }
 0x197   :  { %80 = vsyncpa [#allocation4], 1 }

</bundles_post_ra>
